<compile_context>
chip_gen: v6e
topology: v6e:2x2x1
jax: 0.10.0
libtpu: 0.0.40
codegen_flags: <defaults>
</compile_context>

<pallas_src>
import functools

import jax
import jax.numpy as jnp
from jax import lax
from jax.experimental import pallas as pl
from jax.experimental.pallas import tpu as pltpu


def _vq_kernel(x_ref, et_ref, e2_ref, idx_ref):
    """Nearest-codebook-entry search for one tile of tokens.

    x_ref:   (TM, D)  token tile, f32
    et_ref:  (D,  K)  codebook, pre-transposed and pre-scaled by -2, bf16
    e2_ref:  (1,  K)  precomputed ||e||^2, f32
    idx_ref: (TM, 1)  int32 nearest-entry index per token (output)
    """
    # Score straight off the MXU: -2 * x . e   (bf16 operands, f32 accumulate).
    xe = jnp.dot(x_ref[...].astype(jnp.bfloat16), et_ref[...],
                 preferred_element_type=jnp.float32)              # (TM, K)

    # Distance proxy: ||e||^2 - 2 x.e  (||x||^2 is constant per row, so it
    # does not affect the argmin and is dropped).  Single f32 VPU pass.
    d = xe + e2_ref[...]                                          # (TM, K)
    K = d.shape[-1]

    # First-index argmin over the codebook axis (matches torch.argmin ties).
    min_d = jnp.min(d, axis=-1, keepdims=True)                    # (TM, 1)
    iota = lax.broadcasted_iota(jnp.int32, d.shape, 1)            # (TM, K)
    masked = jnp.where(d == min_d, iota, K)
    idx_ref[...] = jnp.min(masked, axis=-1, keepdims=True)        # (TM, 1)


@functools.partial(jax.jit, static_argnames=("commitment_cost",))
def vq_forward(inputs, embeddings, commitment_cost=0.25):
    """inputs: (N, D, H, W) float32; embeddings: (K, D) float32."""
    N, D, H, W = inputs.shape
    K, De = embeddings.shape
    assert De == D, "embedding_dim must match channel dim"

    # Glue: NCHW -> NHWC -> (M, D)
    x_flat = jnp.transpose(inputs, (0, 2, 3, 1)).reshape(-1, D)
    M = x_flat.shape[0]

    # Token tile.  1024 amortizes per-grid-step overhead with the tiny D=64
    # contraction, stays comfortably inside a 32 MiB VMEM budget on
    # v5e/v6e/v7x.  Small inputs get split into (at least) two tiles so both
    # v7x TensorCores receive work under the "parallel" grid semantic.
    TM_MAX = 1024
    if M >= 2 * TM_MAX:
        TM = TM_MAX
    else:
        TM = max(8, (((M + 1) // 2 + 7) // 8) * 8)
    G = -(-M // TM)
    M_pad = G * TM
    x_pad = jnp.pad(x_flat, ((0, M_pad - M), (0, 0))) if M_pad != M else x_flat

    # Grid-invariant codebook quantities, hoisted out of the kernel.
    e_f32 = embeddings.astype(jnp.float32)                   # (K, D) exact rows
    et_neg2_bf16 = (-2.0 * e_f32).T.astype(jnp.bfloat16)     # (D, K) MXU operand
    e2 = jnp.sum(e_f32 * e_f32, axis=-1)[None, :]            # (1, K) f32

    idx = pl.pallas_call(
        _vq_kernel,
        out_shape=jax.ShapeDtypeStruct((M_pad, 1), jnp.int32),
        grid_spec=pltpu.PrefetchScalarGridSpec(
            num_scalar_prefetch=0,
            grid=(G,),
            in_specs=[
                pl.BlockSpec((TM, D), lambda i: (i, 0)),   # token tile (f32)
                pl.BlockSpec((D, K), lambda i: (0, 0)),    # -2 * codebook^T (bf16)
                pl.BlockSpec((1, K), lambda i: (0, 0)),    # ||e||^2 (f32)
            ],
            out_specs=pl.BlockSpec((TM, 1), lambda i: (i, 0)),
        ),
        compiler_params=pltpu.CompilerParams(
            dimension_semantics=("parallel",),
            vmem_limit_bytes=32 * 1024 * 1024,
        ),
    )(x_pad, et_neg2_bf16, e2)

    idx = idx[:M, 0]

    # Exact index_select + exact f32 MSE in the wrapper (small, fuses well).
    quant_flat = jnp.take(e_f32, idx, axis=0)                # (M, D) exact rows
    diff = quant_flat - x_flat
    mse = jnp.sum(diff * diff) / jnp.float32(M * D)
    # q_latent_loss + commitment_cost * e_latent_loss; both equal MSE in fwd.
    c_loss = (1.0 + commitment_cost) * mse

    # Glue: (M, D) -> NHWC -> NCHW.  Straight-through estimator is identity
    # in the forward pass, so the returned tensor is just `quantized`.
    quantized = jnp.transpose(quant_flat.reshape(N, H, W, D), (0, 3, 1, 2))
    return c_loss, quantized


def make_embeddings(key, num_embeddings=512, embedding_dim=64):
    # Matches nn.Embedding weight init: uniform(-1/K, 1/K).
    lim = 1.0 / num_embeddings
    return jax.random.uniform(
        key, (num_embeddings, embedding_dim), jnp.float32, minval=-lim, maxval=lim
    )


if __name__ == "__main__":
    num_embeddings = 512
    embedding_dim = 64
    commitment_cost = 0.25

    key = jax.random.PRNGKey(0)
    k_emb, k_x = jax.random.split(key)

    embeddings = make_embeddings(k_emb, num_embeddings, embedding_dim)
    # Small input consistent with the module: N=2, D=embedding_dim=64, H=W=8.
    x = jax.random.normal(k_x, (2, embedding_dim, 8, 8), jnp.float32)

    c_loss, quantized = vq_forward(x, embeddings, commitment_cost=commitment_cost)
    jax.block_until_ready((c_loss, quantized))

    assert quantized.shape == x.shape
    assert c_loss.shape == ()
    assert bool(jnp.isfinite(c_loss))
    assert bool(jnp.all(jnp.isfinite(quantized)))

    # Pure-JAX f32 reference (loose tolerances: bf16 distance near-ties may
    # pick an essentially-equidistant entry; per-element codebook spread is
    # only ~2/512, so any such swap changes outputs by < 0.01).
    xf = jnp.transpose(x, (0, 2, 3, 1)).reshape(-1, embedding_dim)
    dist = (jnp.sum(xf * xf, axis=-1, keepdims=True)
            - 2.0 * xf @ embeddings.T
            + jnp.sum(embeddings * embeddings, axis=-1)[None, :])
    ref_idx = jnp.argmin(dist, axis=1)
    ref_q = jnp.take(embeddings, ref_idx, axis=0)
    ref_loss = (1.0 + commitment_cost) * jnp.mean((ref_q - xf) ** 2)
    ref_quantized = jnp.transpose(
        ref_q.reshape(2, 8, 8, embedding_dim), (0, 3, 1, 2))

    assert bool(jnp.abs(c_loss - ref_loss) <= 2e-2 * jnp.abs(ref_loss) + 1e-4), (
        float(c_loss), float(ref_loss))
    assert bool(jnp.max(jnp.abs(quantized - ref_quantized)) < 2e-2)

    print("KERNEL_OK")
</pallas_src>

<mosaic_0001>
module attributes {stable_mosaic.version = 11 : i64} {
  func.func @_vq_kernel(%arg0: i32, %arg1: memref<64x64xf32, #tpu.memory_space<vmem>>, %arg2: memref<64x512xbf16, #tpu.memory_space<vmem>>, %arg3: memref<1x512xf32, #tpu.memory_space<vmem>>, %arg4: memref<64x1xi32, #tpu.memory_space<vmem>>) attributes {dimension_semantics = [#tpu.dimension_semantics<parallel>], iteration_bounds = array<i64: 2>, scalar_prefetch = 0 : i64, scratch_operands = 0 : i64, tpu.core_type = #tpu.core_type<tc>, window_params = [{transform_indices = @transform_0, window_bounds = array<i64: 64, 64>}, {pipeline_mode = #tpu.pipeline_mode<synchronous>, transform_indices = @transform_1, window_bounds = array<i64: 64, 512>}, {pipeline_mode = #tpu.pipeline_mode<synchronous>, transform_indices = @transform_2, window_bounds = array<i64: 1, 512>}, {transform_indices = @transform_3, window_bounds = array<i64: 64, 1>}]} {
    %c0 = arith.constant 0 : index
    %c0_0 = arith.constant 0 : index
    %0 = vector.load %arg1[%c0, %c0_0] : memref<64x64xf32, #tpu.memory_space<vmem>>, vector<64x64xf32>
    %1 = arith.truncf %0 : vector<64x64xf32> to vector<64x64xbf16>
    %c0_1 = arith.constant 0 : index
    %c0_2 = arith.constant 0 : index
    %2 = vector.load %arg2[%c0_1, %c0_2] : memref<64x512xbf16, #tpu.memory_space<vmem>>, vector<64x512xbf16>
    %cst = arith.constant dense<0.000000e+00> : vector<64x512xf32>
    %3 = tpu.matmul %1, %2, %cst {dimension_numbers = #tpu.dot_dimension_numbers<[1], [0], [0], [1], [0, 0, 1, 1], [], []>} : vector<64x64xbf16>, vector<64x512xbf16>, vector<64x512xf32> -> vector<64x512xf32>
    %c0_3 = arith.constant 0 : index
    %c0_4 = arith.constant 0 : index
    %4 = vector.load %arg3[%c0_3, %c0_4] : memref<1x512xf32, #tpu.memory_space<vmem>>, vector<1x512xf32>
    %5 = vector.broadcast %4 : vector<1x512xf32> to vector<64x512xf32>
    %6 = arith.addf %3, %5 : vector<64x512xf32>
    %cst_5 = arith.constant dense<0x7F800000> : vector<64xf32>
    %7 = vector.multi_reduction <minimumf>, %6, %cst_5 [1] : vector<64x512xf32> to vector<64xf32>
    %8 = vector.shape_cast %7 : vector<64xf32> to vector<64x1xf32>
    %9 = tpu.iota {dimensions = array<i32: 1>} : vector<64x512xi32>
    %10 = vector.broadcast %8 : vector<64x1xf32> to vector<64x512xf32>
    %11 = arith.cmpf oeq, %6, %10 : vector<64x512xf32>
    %c512_i32 = arith.constant 512 : i32
    %12 = vector.broadcast %c512_i32 : i32 to vector<64x512xi32>
    %13 = arith.select %11, %9, %12 : vector<64x512xi1>, vector<64x512xi32>
    %cst_6 = arith.constant dense<2147483647> : vector<64xi32>
    %14 = vector.multi_reduction <minsi>, %13, %cst_6 [1] : vector<64x512xi32> to vector<64xi32>
    %15 = vector.shape_cast %14 : vector<64xi32> to vector<64x1xi32>
    %c0_7 = arith.constant 0 : index
    %c0_8 = arith.constant 0 : index
    %16 = vector.load %arg4[%c0_7, %c0_8] : memref<64x1xi32, #tpu.memory_space<vmem>>, vector<64x1xi32>
    tpu.vector_store %arg4[%c0_7, %c0_8], %15 {strides = array<i32>} : memref<64x1xi32, #tpu.memory_space<vmem>>, vector<64x1xi32>,
    return
  }
  func.func @transform_0(%arg0: i32) -> (i32, i32) {
    %c0_i32 = arith.constant 0 : i32
    %c0_i32_0 = arith.constant 0 : i32
    return %arg0, %c0_i32 : i32, i32
  }
  func.func @transform_1(%arg0: i32) -> (i32, i32) {
    %c0_i32 = arith.constant 0 : i32
    %c0_i32_0 = arith.constant 0 : i32
    %c0_i32_1 = arith.constant 0 : i32
    return %c0_i32, %c0_i32_0 : i32, i32
  }
  func.func @transform_2(%arg0: i32) -> (i32, i32) {
    %c0_i32 = arith.constant 0 : i32
    %c0_i32_0 = arith.constant 0 : i32
    %c0_i32_1 = arith.constant 0 : i32
    return %c0_i32, %c0_i32_0 : i32, i32
  }
  func.func @transform_3(%arg0: i32) -> (i32, i32) {
    %c0_i32 = arith.constant 0 : i32
    %c0_i32_0 = arith.constant 0 : i32
    return %arg0, %c0_i32 : i32, i32
  }
}

</mosaic_0001>

<bundles_post_ra>
// kernel: vq_forward.1
= control target key start
LH: loop header
LB: loop body
LE: loop exit
PB: predicated region body
PF: predicated region fallthrough
CT: control target
= control target key end

     0   :  { %s895_s12 = smov 0   ;;  %s1265_s0 = inlined_call_operand.vmem [shape: f32[128,64], index: 0, kind: input, shape index: {}]   ;;  %s1266_s1 = inlined_call_operand.vmem [shape: bf16[64,512], index: 1, kind: input, shape index: {}]   ;;  %s1267_s2 = inlined_call_operand.vmem [shape: f32[1,512], index: 2, kind: input, shape index: {}]   ;;  %s1268_s3 = inlined_call_operand.vmem [shape: s32[128,1], index: 3, kind: output, shape index: {}]  }
   0x1 LB: > { %s798_s13 = sadd.s32 4294967295, %s872_s12   ;;  %p802_p0 = scmp.ge.s32.totalorder %s872_s12, 1  ;;  %s872_s12 = sphi %s895_s12, %s13_s12  }
   0x2   : > { %p138_p1 = scmp.lt.s32.totalorder %s872_s12, 3 }
   0x4   : > { %p139_p2 = pnand %p802_p0, %p138_p1 }
   0x5   : > { %s803_s16 = sshll.u32 (!%p139_p2), %s798_s13, 3 }
   0x6   : > { %142 = sbr.rel (%p139_p2) target bundleno = 693 (0x2b5), region = 32  ;;  %p163_p3 = scmp.lt.s32.totalorder (!%p139_p2), %s803_s16, 15 }
   0xb   : > { %v842_v0 = vld [vmem:[%s1266_s1 + $0x64] ss:$16 sps:$4 sm:$0xff]   ;;  %v844_v1 = vld [vmem:[%s1266_s1 + $0x6c] ss:$16 sps:$4 sm:$0xff]   ;;  %v874_v2 = vmov 0   ;;  %s1270_s16 = smov (!%p163_p3, %s803_s16), 15  ;;  %v205_v29 = vlaneseq }
   0xc   : > { %350 = vmatprep.mubr.bf16.mxu0 %v874_v2  ;;  %423 = vmatprep.mubr.bf16.mxu1 %v874_v2  ;;  %v846_v3 = vld [vmem:[%s1266_s1 + $0x60] ss:$16 sps:$4 sm:$0xff]   ;;  %v847_v4 = vld [vmem:[%s1266_s1 + $0x68] ss:$16 sps:$4 sm:$0xff]   ;;  %v848_v5 = vld [vmem:[%s1266_s1 + $0x44] ss:$16 sps:$4 sm:$0xff]  }
   0xd   : > { %326 = vmatprep.subr.bf16.mxu0 %v842_v0  ;;  %399 = vmatprep.subr.bf16.mxu1 %v844_v1  ;;  %v850_v6 = vld [vmem:[%s1266_s1 + $0x4c] ss:$16 sps:$4 sm:$0xff]   ;;  %v852_v7 = vld [vmem:[%s1266_s1 + $0x40] ss:$16 sps:$4 sm:$0xff]   ;;  %v853_v8 = vld [vmem:[%s1266_s1 + $0x48] ss:$16 sps:$4 sm:$0xff]  }
   0xe   : > { %327 = vmatpush1.bf16.msra.mxu0 %v846_v3  ;;  %400 = vmatpush1.bf16.msra.mxu1 %v847_v4  ;;  %v854_v9 = vld [vmem:[%s1266_s1 + $0x24] ss:$16 sps:$4 sm:$0xff]   ;;  %s804_s6 = sshll.u32 %s1270_s16, 3  ;;  %v856_v10 = vld [vmem:[%s1266_s1 + $0x2c] ss:$16 sps:$4 sm:$0xff]   ;;  %vm305_vm0 = vcmask 523264  }
   0xf   : > { %328 = vmatprep.subr.bf16.mxu0 %v848_v5  ;;  %401 = vmatprep.subr.bf16.mxu1 %v850_v6  ;;  %v858_v11 = vld [vmem:[%s1266_s1 + $0x20] ss:$16 sps:$4 sm:$0xff]   ;;  %v859_v12 = vld [vmem:[%s1266_s1 + $0x28] ss:$16 sps:$4 sm:$0xff]   ;;  %v860_v13 = vld [vmem:[%s1266_s1 + $0x4] ss:$16 sps:$4 sm:$0xff]   ;;  %s953_s21 = scalar_lea.vmem %s1265_s0, %s804_s6  ;;  %s1244_s30 = scalar_lea.vmem %s1268_s3, %s804_s6 }
  0x10   : > { %v862_v14 = vld [vmem:[%s1266_s1 + $0xc] ss:$16 sps:$4 sm:$0xff]   ;;  %v864_v15 = vld [vmem:[%s1266_s1] ss:$16 sps:$4 sm:$0xff]   ;;  %v865_v16 = vld [vmem:[%s1266_s1 + $0x8] ss:$16 sps:$4 sm:$0xff]  }
  0x11   : > { %v175_v17 = vld [vmem:[%s953_s21] sm:$0xff]  ;;  %v176_v18 = vld [vmem:[%s953_s21 + $0x8] sm:$0xff]  ;;  %v177_v20 = vld [vmem:[%s953_s21 + $0x10] sm:$0xff]  ;;  %v206_v30 = vshrl.u32 %v205_v29, 7 }
  0x12   : > { %329 = vmatpush1.bf16.msra.mxu0 %v852_v7  ;;  %402 = vmatpush1.bf16.msra.mxu1 %v853_v8  ;;  %v183_v19 = vpack.c.bf16 %v176_v18, %v175_v17  ;;  %v178_v21 = vld [vmem:[%s953_s21 + $0x18] sm:$0xff]  ;;  %v179_v23 = vld [vmem:[%s953_s21 + $0x20] sm:$0xff]  ;;  %v180_v24 = vld [vmem:[%s953_s21 + $0x28] sm:$0xff] }
  0x13   : > { %330 = vmatprep.subr.bf16.mxu0 %v854_v9  ;;  %403 = vmatprep.subr.bf16.mxu1 %v856_v10  ;;  %v184_v22 = vpack.c.bf16 %v178_v21, %v177_v20  ;;  %v185_v25 = vpack.c.bf16 %v180_v24, %v179_v23  ;;  %v181_v26 = vld [vmem:[%s953_s21 + $0x30] sm:$0xff]  ;;  %v182_v27 = vld [vmem:[%s953_s21 + $0x38] sm:$0xff]  ;;  %v207_v31 = vsub.s32 0, %v206_v30  ;;  %v215_v32 = vsub.s32 2, %v206_v30  ;;  %v203_v34 = vld [vmem:[%s1267_s2] sm:$0xf] }
  0x14   : > { %v186_v28 = vpack.c.bf16 %v182_v27, %v181_v26  ;;  %v211_v33 = vsub.s32 1, %v206_v30  ;;  %v219_v38 = vsub.s32 3, %v206_v30 }
  0x15   : > { %v981_v35 = vrot.slane %v203_v34, %v207_v31  ;;  %v983_v36 = vrot.slane %v203_v34, %v215_v32 }
  0x16   : > { %331 = vmatpush1.bf16.msra.mxu0 %v858_v11  ;;  %404 = vmatpush1.bf16.msra.mxu1 %v859_v12  ;;  %v985_v37 = vrot.slane %v203_v34, %v211_v33  ;;  %v996_v46 = vrot.slane %v203_v34, %v219_v38 }
  0x17   : > { %332 = vmatprep.subr.bf16.mxu0 %v860_v13  ;;  %405 = vmatprep.subr.bf16.mxu1 %v862_v14 }
  0x1a   : > { %333 = vmatpush1.bf16.msra.mxu0 %v864_v15  ;;  %406 = vmatpush1.bf16.msra.mxu1 %v865_v16 }
  0x1d   : > { %823 = vmatmul.mubr.msk.bf16.vlgmr.msra.gmra.mxu0 %vm305_vm0, %v183_v19  ;;  %827 = vmatmul.mubr.msk.bf16.vlgmr.msra.gmra.mxu1 %vm305_vm0, %v183_v19 }
  0x1e   : > { %360 = vmatprep.mubr.bf16.mxu0 %v874_v2  ;;  %433 = vmatprep.mubr.bf16.mxu1 %v874_v2 }
  0x25   : > { %824 = vmatmul.mubr.msk.bf16.gmra.mxu0 %vm305_vm0, %v184_v22  ;;  %828 = vmatmul.mubr.msk.bf16.gmra.mxu1 %vm305_vm0, %v184_v22 }
  0x26   : > { %370 = vmatprep.mubr.bf16.mxu0 %v874_v2  ;;  %443 = vmatprep.mubr.bf16.mxu1 %v874_v2 }
  0x2d   : > { %825 = vmatmul.mubr.msk.bf16.gmra.mxu0 %vm305_vm0, %v185_v25  ;;  %829 = vmatmul.mubr.msk.bf16.gmra.mxu1 %vm305_vm0, %v185_v25 }
  0x2e   : > { %380 = vmatprep.mubr.bf16.mxu0 %v874_v2  ;;  %453 = vmatprep.mubr.bf16.mxu1 %v874_v2 }
  0x35   : > { %826 = vmatmul.mubr.msk.bf16.gmra.mxu0 %vm305_vm0, %v186_v28  ;;  %830 = vmatmul.mubr.msk.bf16.gmra.mxu1 %vm305_vm0, %v186_v28 }
  0xdd   : > { %v352_v39 = vpop.f32.mrf.mxu0  ;;  %v425_v40 = vpop.f32.mrf.mxu1 }
  0xde   : > { %v988_v43 = vadd.f32 %v352_v39, %v981_v35  ;;  %v991_v44 = vadd.f32 %v425_v40, %v983_v36 }
  0xdf   : > { %v354_v41 = vpop.f32.mrf.mxu0  ;;  %v427_v42 = vpop.f32.mrf.mxu1 }
  0xe0   : > { %v994_v45 = vadd.f32 %v354_v41, %v985_v37  ;;  %v1001_v52 = vadd.f32 %v427_v42, %v996_v46 }
  0xe1   : > { %v356_v47 = vpop.f32.mrf.mxu0  ;;  %v429_v48 = vpop.f32.mrf.mxu1 }
  0xe2   : > { %v464_v49 = vmin.f32 %v988_v43, %v994_v45  ;;  %v1004_v53 = vadd.f32 %v356_v47, %v981_v35  ;;  %v1011_v58 = vadd.f32 %v429_v48, %v983_v36 }
  0xe3   : > { %v358_v50 = vpop.f32.mrf.mxu0  ;;  %v431_v51 = vpop.f32.mrf.mxu1 }
  0xe4   : > { %v1007_v54 = vadd.f32 %v358_v50, %v985_v37  ;;  %v465_v55 = vmin.f32 %v464_v49, %v991_v44  ;;  %v1017_v61 = vadd.f32 %v431_v51, %v996_v46 }
  0xe5   : > { %v362_v56 = vpop.f32.mrf.mxu0  ;;  %v435_v57 = vpop.f32.mrf.mxu1 }
  0xe6   : > { %v469_v59 = vmin.f32 %v1004_v53, %v1007_v54  ;;  %v466_v60 = vmin.f32 %v465_v55, %v1001_v52  ;;  %v1020_v0 = vadd.f32 %v362_v56, %v981_v35  ;;  %v1023_v1 = vadd.f32 %v435_v57, %v983_v36 }
  0xe7   : > { %v364_v62 = vpop.f32.mrf.mxu0  ;;  %v437_v63 = vpop.f32.mrf.mxu1 }
  0xe8   : > { %v1026_v2 = vadd.f32 %v364_v62, %v985_v37  ;;  %467 = vmin.xlane.f32.xlu0 %v466_v60  ;;  %v470_v3 = vmin.f32 %v469_v59, %v1011_v58  ;;  %v1033_v10 = vadd.f32 %v437_v63, %v996_v46 }
  0xe9   : > { %v366_v4 = vpop.f32.mrf.mxu0  ;;  %v439_v5 = vpop.f32.mrf.mxu1 }
  0xea   : > { %v474_v6 = vmin.f32 %v1020_v0, %v1026_v2  ;;  %v471_v7 = vmin.f32 %v470_v3, %v1017_v61  ;;  %v1036_v11 = vadd.f32 %v366_v4, %v981_v35  ;;  %v1043_v16 = vadd.f32 %v439_v5, %v983_v36 }
  0xeb   : > { %v368_v8 = vpop.f32.mrf.mxu0  ;;  %v441_v9 = vpop.f32.mrf.mxu1 }
  0xec   : > { %v1039_v12 = vadd.f32 %v368_v8, %v985_v37  ;;  %472 = vmin.xlane.f32.xlu0 %v471_v7  ;;  %v475_v13 = vmin.f32 %v474_v6, %v1023_v1  ;;  %v1049_v19 = vadd.f32 %v441_v9, %v996_v46 }
  0xed   : > { %v372_v14 = vpop.f32.mrf.mxu0  ;;  %v445_v15 = vpop.f32.mrf.mxu1 }
  0xee   : > { %v479_v17 = vmin.f32 %v1036_v11, %v1039_v12  ;;  %v476_v18 = vmin.f32 %v475_v13, %v1033_v10  ;;  %v1052_v22 = vadd.f32 %v372_v14, %v981_v35  ;;  %v1055_v23 = vadd.f32 %v445_v15, %v983_v36 }
  0xef   : > { %v374_v20 = vpop.f32.mrf.mxu0  ;;  %v447_v21 = vpop.f32.mrf.mxu1 }
  0xf0   : > { %v1058_v24 = vadd.f32 %v374_v20, %v985_v37  ;;  %477 = vmin.xlane.f32.xlu1 %v476_v18  ;;  %v480_v25 = vmin.f32 %v479_v17, %v1043_v16  ;;  %v1065_v33 = vadd.f32 %v447_v21, %v996_v46  ;;  %v1118_v18 = vand.u32 127, %v205_v29 }
  0xf1   : > { %v376_v26 = vpop.f32.mrf.mxu0  ;;  %v449_v27 = vpop.f32.mrf.mxu1 }
  0xf2   : > { %v484_v28 = vmin.f32 %v1052_v22, %v1058_v24  ;;  %v481_v30 = vmin.f32 %v480_v25, %v1049_v19  ;;  %v1068_v34 = vadd.f32 %v376_v26, %v981_v35  ;;  %v1075_v42 = vadd.f32 %v449_v27, %v983_v36 }
  0xf3   : > { %v378_v31 = vpop.f32.mrf.mxu0  ;;  %v451_v32 = vpop.f32.mrf.mxu1  ;;  %v1124_v21 = vadd.s32 256, %v1118_v18  ;;  %v1132_v29 = vadd.s32 384, %v1118_v18 }
  0xf4   : > { %v1071_v38 = vadd.f32 %v378_v31, %v985_v37  ;;  %482 = vmin.xlane.f32.xlu1 %v481_v30  ;;  %v485_v39 = vmin.f32 %v484_v28, %v1055_v23  ;;  %v1081_v49 = vadd.f32 %v451_v32, %v996_v46 }
  0xf5   : > { %v382_v40 = vpop.f32.mrf.mxu0  ;;  %v455_v41 = vpop.f32.mrf.mxu1 }
  0xf6   : > { %v489_v47 = vmin.f32 %v1068_v34, %v1071_v38  ;;  %v486_v48 = vmin.f32 %v485_v39, %v1065_v33  ;;  %v1084_v55 = vadd.f32 %v382_v40, %v981_v35  ;;  %v1087_v56 = vadd.f32 %v455_v41, %v983_v36 }
  0xf7   : > { %v384_v50 = vpop.f32.mrf.mxu0  ;;  %v457_v51 = vpop.f32.mrf.mxu1 }
  0xf8   : > { %v1090_v57 = vadd.f32 %v384_v50, %v985_v37  ;;  %487 = vmin.xlane.f32.xlu0 %v486_v48  ;;  %v490_v59 = vmin.f32 %v489_v47, %v1075_v42  ;;  %v1097_v5 = vadd.f32 %v457_v51, %v996_v46 }
  0xf9   : > { %v386_v60 = vpop.f32.mrf.mxu0  ;;  %v459_v62 = vpop.f32.mrf.mxu1 }
  0xfa   : > { %v494_v63 = vmin.f32 %v1084_v55, %v1090_v57  ;;  %v491_v3 = vmin.f32 %v490_v59, %v1081_v49  ;;  %v1100_v6 = vadd.f32 %v386_v60, %v981_v35  ;;  %v1107_v13 = vadd.f32 %v459_v62, %v983_v36 }
  0xfb   : > { %v388_v4 = vpop.f32.mrf.mxu0  ;;  %v461_v9 = vpop.f32.mrf.mxu1  ;;  %v1121_v36 = vadd.s32 128, %v1118_v18 }
  0xfc   : > { %v1103_v7 = vadd.f32 %v388_v4, %v985_v37  ;;  %492 = vmin.xlane.f32.xlu1 %v491_v3  ;;  %v495_v8 = vmin.f32 %v494_v63, %v1087_v56  ;;  %v1113_v17 = vadd.f32 %v461_v9, %v996_v46 }
  0xfe   : > { %v499_v14 = vmin.f32 %v1100_v6, %v1103_v7  ;;  %v496_v15 = vmin.f32 %v495_v8, %v1097_v5 }
 0x100   : > { %497 = vmin.xlane.f32.xlu0 %v496_v15  ;;  %v500_v35 = vmin.f32 %v499_v14, %v1107_v13 }
 0x102   : > { %v501_v37 = vmin.f32 %v500_v35, %v1113_v17 }
 0x104   : > { %502 = vmin.xlane.f32.xlu1 %v501_v37 }
 0x171   : > { %v468_v20 = vpop.xlane.xlu0 %467 }
 0x172   : > { %vm509_vm1 = vcmp.eq.f32.partialorder %v988_v43, %v468_v20  ;;  %vm510_vm2 = vcmp.eq.f32.partialorder %v994_v45, %v468_v20  ;;  %vm511_vm3 = vcmp.eq.f32.partialorder %v991_v44, %v468_v20  ;;  %vm512_vm5 = vcmp.eq.f32.partialorder %v1001_v52, %v468_v20 }
 0x173   : > { %v541_v46 = vsel %vm509_vm1, %v1118_v18, 512  ;;  %v542_v25 = vsel %vm510_vm2, %v1121_v36, 512  ;;  %v543_v28 = vsel %vm511_vm3, %v1124_v21, 512  ;;  %v544_v45 = vsel %vm512_vm5, %v1132_v29, 512 }
 0x174   : > { %vm573_vm4 = vcmp.lt.s32.totalorder %v541_v46, %v542_v25 }
 0x175   : > { %v473_v26 = vpop.xlane.xlu0 %472  ;;  %v574_v27 = vsel %vm573_vm4, %v541_v46, %v542_v25 }
 0x176   : > { %vm513_vm6 = vcmp.eq.f32.partialorder %v1004_v53, %v473_v26  ;;  %vm514_vm7 = vcmp.eq.f32.partialorder %v1007_v54, %v473_v26  ;;  %vm515_vm8 = vcmp.eq.f32.partialorder %v1011_v58, %v473_v26  ;;  %vm575_vm9 = vcmp.lt.s32.totalorder %v574_v27, %v543_v28 }
 0x177   : > { %v545_v43 = vsel %vm513_vm6, %v1118_v18, 512  ;;  %v546_v44 = vsel %vm514_vm7, %v1121_v36, 512  ;;  %v576_v30 = vsel %vm575_vm9, %v574_v27, %v543_v28  ;;  %vm516_vm12 = vcmp.eq.f32.partialorder %v1017_v61, %v473_v26 }
 0x178   : > { %vm593_vm10 = vcmp.lt.s32.totalorder %v545_v43, %v546_v44  ;;  %vm577_vm11 = vcmp.lt.s32.totalorder %v576_v30, %v544_v45  ;;  %v547_v53 = vsel %vm515_vm8, %v1124_v21, 512  ;;  %v548_v40 = vsel %vm516_vm12, %v1132_v29, 512 }
 0x179   : > { %v478_v52 = vpop.xlane.xlu1 %477  ;;  %v594_v31 = vsel %vm593_vm10, %v545_v43, %v546_v44  ;;  %v1149_v32 = vsel %vm577_vm11, %v576_v30, %v544_v45 }
 0x17a   : > { %vm517_vm13 = vcmp.eq.f32.partialorder %v1020_v0, %v478_v52  ;;  %vm518_vm14 = vcmp.eq.f32.partialorder %v1026_v2, %v478_v52  ;;  %vm519_vm15 = vcmp.eq.f32.partialorder %v1023_v1, %v478_v52  ;;  %v580_v39 = vshra.s32 %v1149_v32, 16 }
 0x17b   : > { %v549_v54 = vsel %vm517_vm13, %v1118_v18, 512  ;;  %v550_v58 = vsel %vm518_vm14, %v1121_v36, 512  ;;  %vm595_vm1 = vcmp.lt.s32.totalorder %v594_v31, %v547_v53  ;;  %vm520_vm2 = vcmp.eq.f32.partialorder %v1033_v10, %v478_v52 }
 0x17c   : > { %vm613_vm0 = vcmp.lt.s32.totalorder %v549_v54, %v550_v58  ;;  %v596_v0 = vsel %vm595_vm1, %v594_v31, %v547_v53  ;;  %v551_v2 = vsel %vm519_vm15, %v1124_v21, 512  ;;  %v1161_v10 = vcvt.s32.f32 %v580_v39 }
 0x17d   : > { %v483_v61 = vpop.xlane.xlu1 %482  ;;  %v614_v41 = vsel %vm613_vm0, %v549_v54, %v550_v58  ;;  %vm597_vm8 = vcmp.lt.s32.totalorder %v596_v0, %v548_v40  ;;  %v552_v48 = vsel %vm520_vm2, %v1132_v29, 512 }
 0x17e   : > { %vm521_vm3 = vcmp.eq.f32.partialorder %v1036_v11, %v483_v61  ;;  %vm522_vm4 = vcmp.eq.f32.partialorder %v1039_v12, %v483_v61  ;;  %vm523_vm5 = vcmp.eq.f32.partialorder %v1043_v16, %v483_v61  ;;  %vm524_vm6 = vcmp.eq.f32.partialorder %v1049_v19, %v483_v61  ;;  %583 = vmin.xlane.f32.xlu0 %v1161_v10 }
 0x17f   : > { %v553_v1 = vsel %vm521_vm3, %v1118_v18, 512  ;;  %v554_v47 = vsel %vm522_vm4, %v1121_v36, 512  ;;  %vm615_vm9 = vcmp.lt.s32.totalorder %v614_v41, %v551_v2  ;;  %v555_v50 = vsel %vm523_vm5, %v1124_v21, 512 }
 0x180   : > { %vm633_vm7 = vcmp.lt.s32.totalorder %v553_v1, %v554_v47  ;;  %v1166_v12 = vsel %vm597_vm8, %v596_v0, %v548_v40  ;;  %v616_v16 = vsel %vm615_vm9, %v614_v41, %v551_v2  ;;  %v556_v59 = vsel %vm524_vm6, %v1132_v29, 512 }
 0x181   : > { %v488_v11 = vpop.xlane.xlu0 %487  ;;  %v634_v51 = vsel %vm633_vm7, %v553_v1, %v554_v47  ;;  %v600_v63 = vshra.s32 %v1166_v12, 16  ;;  %vm617_vm15 = vcmp.lt.s32.totalorder %v616_v16, %v552_v48  ;;  %v579_v0 = vand.u32 65535, %v1149_v32 }
 0x182   : > { %vm525_vm10 = vcmp.eq.f32.partialorder %v1052_v22, %v488_v11  ;;  %vm526_vm11 = vcmp.eq.f32.partialorder %v1058_v24, %v488_v11  ;;  %vm527_vm12 = vcmp.eq.f32.partialorder %v1055_v23, %v488_v11  ;;  %vm528_vm13 = vcmp.eq.f32.partialorder %v1065_v33, %v488_v11 }
 0x183   : > { %v557_v60 = vsel %vm525_vm10, %v1118_v18, 512  ;;  %v558_v62 = vsel %vm526_vm11, %v1121_v36, 512  ;;  %v559_v3 = vsel %vm527_vm12, %v1124_v21, 512  ;;  %vm635_vm0 = vcmp.lt.s32.totalorder %v634_v51, %v555_v50 }
 0x184   : > { %vm653_vm14 = vcmp.lt.s32.totalorder %v557_v60, %v558_v62  ;;  %v1179_v22 = vcvt.s32.f32 %v600_v63  ;;  %v1181_v24 = vsel %vm617_vm15, %v616_v16, %v552_v48  ;;  %v636_v19 = vsel %vm635_vm0, %v634_v51, %v555_v50 }
 0x185   : > { %v493_v23 = vpop.xlane.xlu1 %492  ;;  %v654_v4 = vsel %vm653_vm14, %v557_v60, %v558_v62  ;;  %v560_v8 = vsel %vm528_vm13, %v1132_v29, 512  ;;  %v620_v15 = vshra.s32 %v1181_v24, 16  ;;  %vm637_vm6 = vcmp.lt.s32.totalorder %v636_v19, %v556_v59 }
 0x186   : > { %vm529_vm1 = vcmp.eq.f32.partialorder %v1068_v34, %v493_v23  ;;  %vm530_vm2 = vcmp.eq.f32.partialorder %v1071_v38, %v493_v23  ;;  %vm531_vm3 = vcmp.eq.f32.partialorder %v1075_v42, %v493_v23  ;;  %603 = vmin.xlane.f32.xlu1 %v1179_v22  ;;  %vm532_vm4 = vcmp.eq.f32.partialorder %v1081_v49, %v493_v23 }
 0x187   : > { %v561_v9 = vsel %vm529_vm1, %v1118_v18, 512  ;;  %v562_v14 = vsel %vm530_vm2, %v1121_v36, 512  ;;  %v563_v34 = vsel %vm531_vm3, %v1124_v21, 512  ;;  %vm655_vm7 = vcmp.lt.s32.totalorder %v654_v4, %v559_v3 }
 0x188   : > { %vm673_vm5 = vcmp.lt.s32.totalorder %v561_v9, %v562_v14  ;;  %v1195_v38 = vcvt.s32.f32 %v620_v15  ;;  %v1197_v33 = vsel %vm637_vm6, %v636_v19, %v556_v59  ;;  %v656_v35 = vsel %vm655_vm7, %v654_v4, %v559_v3 }
 0x189   : > { %v498_v42 = vpop.xlane.xlu0 %497  ;;  %v674_v37 = vsel %vm673_vm5, %v561_v9, %v562_v14  ;;  %v564_v20 = vsel %vm532_vm4, %v1132_v29, 512  ;;  %v640_v26 = vshra.s32 %v1197_v33, 16  ;;  %vm657_vm13 = vcmp.lt.s32.totalorder %v656_v35, %v560_v8 }
 0x18a   : > { %vm533_vm8 = vcmp.eq.f32.partialorder %v1084_v55, %v498_v42  ;;  %vm534_vm9 = vcmp.eq.f32.partialorder %v1090_v57, %v498_v42  ;;  %vm535_vm10 = vcmp.eq.f32.partialorder %v1087_v56, %v498_v42  ;;  %623 = vmin.xlane.f32.xlu0 %v1195_v38  ;;  %vm536_vm11 = vcmp.eq.f32.partialorder %v1097_v5, %v498_v42 }
 0x18b   : > { %v565_v46 = vsel %vm533_vm8, %v1118_v18, 512  ;;  %v566_v25 = vsel %vm534_vm9, %v1121_v36, 512  ;;  %v567_v55 = vsel %vm535_vm10, %v1124_v21, 512  ;;  %vm675_vm14 = vcmp.lt.s32.totalorder %v674_v37, %v563_v34 }
 0x18c   : > { %vm693_vm12 = vcmp.lt.s32.totalorder %v565_v46, %v566_v25  ;;  %v1211_v56 = vcvt.s32.f32 %v640_v26  ;;  %v1213_v49 = vsel %vm657_vm13, %v656_v35, %v560_v8  ;;  %v676_v27 = vsel %vm675_vm14, %v674_v37, %v563_v34 }
 0x18d   : > { %v503_v57 = vpop.xlane.xlu1 %502  ;;  %v694_v28 = vsel %vm693_vm12, %v565_v46, %v566_v25  ;;  %v568_v43 = vsel %vm536_vm11, %v1132_v29, 512  ;;  %v660_v30 = vshra.s32 %v1213_v49, 16  ;;  %vm677_vm4 = vcmp.lt.s32.totalorder %v676_v27, %v564_v20 }
 0x18e   : > { %vm537_vm15 = vcmp.eq.f32.partialorder %v1100_v6, %v503_v57  ;;  %vm538_vm0 = vcmp.eq.f32.partialorder %v1103_v7, %v503_v57  ;;  %vm539_vm1 = vcmp.eq.f32.partialorder %v1107_v13, %v503_v57  ;;  %643 = vmin.xlane.f32.xlu1 %v1211_v56  ;;  %vm540_vm2 = vcmp.eq.f32.partialorder %v1113_v17, %v503_v57 }
 0x18f   : > { %v569_v44 = vsel %vm537_vm15, %v1118_v18, 512  ;;  %v570_v45 = vsel %vm538_vm0, %v1121_v36, 512  ;;  %v571_v6 = vsel %vm539_vm1, %v1124_v21, 512  ;;  %vm695_vm5 = vcmp.lt.s32.totalorder %v694_v28, %v567_v55 }
 0x190   : > { %vm713_vm3 = vcmp.lt.s32.totalorder %v569_v44, %v570_v45  ;;  %v662_v7 = vcvt.s32.f32 %v660_v30  ;;  %v678_v13 = vsel %vm677_vm4, %v676_v27, %v564_v20  ;;  %v696_v52 = vsel %vm695_vm5, %v694_v28, %v567_v55 }
 0x191   : > { %v714_v5 = vsel %vm713_vm3, %v569_v44, %v570_v45  ;;  %v680_v31 = vshra.s32 %v678_v13, 16  ;;  %vm697_vm6 = vcmp.lt.s32.totalorder %v696_v52, %v568_v43  ;;  %v572_v18 = vsel %vm540_vm2, %v1132_v29, 512 }
 0x192   : > { %vm715_vm7 = vcmp.lt.s32.totalorder %v714_v5, %v571_v6  ;;  %663 = vmin.xlane.f32.xlu0 %v662_v7  ;;  %v698_v53 = vsel %vm697_vm6, %v696_v52, %v568_v43  ;;  %v581_v2 = vcvt.s32.f32 %v579_v0  ;;  %v599_v17 = vand.u32 65535, %v1166_v12 }
 0x193   : > { %v716_v36 = vsel %vm715_vm7, %v714_v5, %v571_v6  ;;  %v682_v54 = vcvt.s32.f32 %v680_v31  ;;  %v700_v58 = vshra.s32 %v698_v53, 16  ;;  %v619_v48 = vand.u32 65535, %v1181_v24 }
 0x194   : > { %vm717_vm8 = vcmp.lt.s32.totalorder %v716_v36, %v572_v18  ;;  %v601_v47 = vcvt.s32.f32 %v599_v17  ;;  %v639_v32 = vand.u32 65535, %v1197_v33  ;;  %v659_v12 = vand.u32 65535, %v1213_v49 }
 0x195   : > { %v718_v21 = vsel %vm717_vm8, %v716_v36, %v572_v18  ;;  %683 = vmin.xlane.f32.xlu1 %v682_v54  ;;  %v702_v39 = vcvt.s32.f32 %v700_v58  ;;  %v621_v16 = vcvt.s32.f32 %v619_v48  ;;  %v679_v62 = vand.u32 65535, %v678_v13 }
 0x196   : > { %v720_v61 = vshra.s32 %v718_v21, 16  ;;  %v641_v59 = vcvt.s32.f32 %v639_v32  ;;  %v661_v3 = vcvt.s32.f32 %v659_v12  ;;  %v719_v4 = vand.u32 65535, %v718_v21 }
 0x197   : > { %703 = vmin.xlane.f32.xlu0 %v702_v39  ;;  %v681_v19 = vcvt.s32.f32 %v679_v62  ;;  %vm733_vm1 = vcmask 7168  }
 0x198   : > { %v722_v40 = vcvt.s32.f32 %v720_v61 }
 0x19a   : > { %723 = vmin.xlane.f32.xlu1 %v722_v40 }
 0x207   : > { %v584_v41 = vpop.xlane.xlu0 %583 }
 0x208   : > { %vm585_vm9 = vcmp.eq.f32.partialorder %v1161_v10, %v584_v41  ;;  %v590_v33 = vcvt.f32.s32 %v584_v41 }
 0x209   : > { %v586_v1 = vsel %vm585_vm9, %v581_v2, inf }
 0x20a   : > { %587 = vmin.xlane.f32.xlu0 %v586_v1  ;;  %v591_v37 = vshll.u32 %v590_v33, 16 }
 0x20f   : > { %v604_v29 = vpop.xlane.xlu1 %603 }
 0x210   : > { %vm605_vm10 = vcmp.eq.f32.partialorder %v1179_v22, %v604_v29  ;;  %v699_v22 = vand.u32 65535, %v698_v53  ;;  %v610_v46 = vcvt.f32.s32 %v604_v29 }
 0x211   : > { %v606_v50 = vsel %vm605_vm10, %v601_v47, inf }
 0x212   : > { %607 = vmin.xlane.f32.xlu1 %v606_v50  ;;  %v701_v14 = vcvt.s32.f32 %v699_v22  ;;  %v611_v55 = vshll.u32 %v610_v46, 16 }
 0x213   : > { %v624_v11 = vpop.xlane.xlu0 %623 }
 0x214   : > { %vm625_vm11 = vcmp.eq.f32.partialorder %v1195_v38, %v624_v11  ;;  %v721_v38 = vcvt.s32.f32 %v719_v4 }
 0x215   : > { %v626_v51 = vsel %vm625_vm11, %v621_v16, inf }
 0x216   : > { %627 = vmin.xlane.f32.xlu0 %v626_v51 }
 0x217   : > { %v644_v10 = vpop.xlane.xlu1 %643 }
 0x218   : > { %vm645_vm12 = vcmp.eq.f32.partialorder %v1211_v56, %v644_v10  ;;  %v630_v56 = vcvt.f32.s32 %v624_v11  ;;  %v650_v43 = vcvt.f32.s32 %v644_v10 }
 0x219   : > { %v646_v60 = vsel %vm645_vm12, %v641_v59, inf }
 0x21a   : > { %647 = vmin.xlane.f32.xlu1 %v646_v60  ;;  %v631_v28 = vshll.u32 %v630_v56, 16  ;;  %v651_v6 = vshll.u32 %v650_v43, 16 }
 0x21b   : > { %v664_v63 = vpop.xlane.xlu0 %663 }
 0x21c   : > { %vm665_vm13 = vcmp.eq.f32.partialorder %v662_v7, %v664_v63  ;;  %v670_v7 = vcvt.f32.s32 %v664_v63 }
 0x21d   : > { %v666_v23 = vsel %vm665_vm13, %v661_v3, inf }
 0x21e   : > { %667 = vmin.xlane.f32.xlu0 %v666_v23  ;;  %v684_v24 = vpop.xlane.xlu1 %683  ;;  %v671_v53 = vshll.u32 %v670_v7, 16 }
 0x21f   : > { %vm685_vm14 = vcmp.eq.f32.partialorder %v682_v54, %v684_v24  ;;  %v690_v5 = vcvt.f32.s32 %v684_v24 }
 0x220   : > { %v686_v8 = vsel %vm685_vm14, %v681_v19, inf  ;;  %v704_v9 = vpop.xlane.xlu0 %703 }
 0x221   : > { %687 = vmin.xlane.f32.xlu1 %v686_v8  ;;  %vm705_vm15 = vcmp.eq.f32.partialorder %v702_v39, %v704_v9  ;;  %v710_v36 = vcvt.f32.s32 %v704_v9  ;;  %v691_v21 = vshll.u32 %v690_v5, 16 }
 0x222   : > { %v706_v15 = vsel %vm705_vm15, %v701_v14, inf }
 0x223   : > { %v724_v34 = vpop.xlane.xlu1 %723  ;;  %707 = vmin.xlane.f32.xlu0 %v706_v15  ;;  %v711_v0 = vshll.u32 %v710_v36, 16 }
 0x224   : > { %vm725_vm0 = vcmp.eq.f32.partialorder %v722_v40, %v724_v34  ;;  %v730_v39 = vcvt.f32.s32 %v724_v34 }
 0x225   : > { %v726_v42 = vsel %vm725_vm0, %v721_v38, inf }
 0x226   : > { %727 = vmin.xlane.f32.xlu1 %v726_v42  ;;  %v731_v17 = vshll.u32 %v730_v39, 16 }
 0x293   : > { %v588_v35 = vpop.xlane.xlu0 %587 }
 0x294   : > { %v589_v20 = vcvt.f32.s32 %v588_v35 }
 0x296   : > { %v592_v25 = vadd.s32 %v591_v37, %v589_v20 }
 0x298   : > { %734 = vst.msk [vmem:[%s1244_s30] sm:$0xff] %vm733_vm1, %v592_v25 }
 0x29b   : > { %v608_v26 = vpop.xlane.xlu1 %607 }
 0x29c   : > { %v609_v57 = vcvt.f32.s32 %v608_v26 }
 0x29e   : > { %v612_v49 = vadd.s32 %v611_v55, %v609_v57 }
 0x29f   : > { %v628_v27 = vpop.xlane.xlu0 %627 }
 0x2a0   : > { %735 = vst.msk [vmem:[%s1244_s30 + $0x8] sm:$0xff] %vm733_vm1, %v612_v49  ;;  %v629_v44 = vcvt.f32.s32 %v628_v27 }
 0x2a2   : > { %v632_v45 = vadd.s32 %v631_v28, %v629_v44 }
 0x2a3   : > { %v648_v30 = vpop.xlane.xlu1 %647 }
 0x2a4   : > { %736 = vst.msk [vmem:[%s1244_s30 + $0x10] sm:$0xff] %vm733_vm1, %v632_v45  ;;  %v649_v13 = vcvt.f32.s32 %v648_v30 }
 0x2a6   : > { %v652_v52 = vadd.s32 %v651_v6, %v649_v13 }
 0x2a7   : > { %v668_v31 = vpop.xlane.xlu0 %667 }
 0x2a8   : > { %737 = vst.msk [vmem:[%s1244_s30 + $0x18] sm:$0xff] %vm733_vm1, %v652_v52  ;;  %v669_v18 = vcvt.f32.s32 %v668_v31 }
 0x2aa   : > { %v672_v54 = vadd.s32 %v671_v53, %v669_v18  ;;  %v688_v58 = vpop.xlane.xlu1 %687 }
 0x2ab   : > { %v689_v61 = vcvt.f32.s32 %v688_v58 }
 0x2ac   : > { %738 = vst.msk [vmem:[%s1244_s30 + $0x20] sm:$0xff] %vm733_vm1, %v672_v54  ;;  %v708_v40 = vpop.xlane.xlu0 %707 }
 0x2ad   : > { %v692_v41 = vadd.s32 %v691_v21, %v689_v61  ;;  %v709_v2 = vcvt.f32.s32 %v708_v40 }
 0x2af   : > { %v728_v1 = vpop.xlane.xlu1 %727  ;;  %739 = vst.msk [vmem:[%s1244_s30 + $0x28] sm:$0xff] %vm733_vm1, %v692_v41  ;;  %v712_v29 = vadd.s32 %v711_v0, %v709_v2 }
 0x2b0   : > { %v729_v47 = vcvt.f32.s32 %v728_v1 }
 0x2b1   : > { %740 = vst.msk [vmem:[%s1244_s30 + $0x30] sm:$0xff] %vm733_vm1, %v712_v29 }
 0x2b2   : > { %v732_v48 = vadd.s32 %v731_v17, %v729_v47 }
 0x2b4   : > { %741 = vst.msk [vmem:[%s1244_s30 + $0x38] sm:$0xff] %vm733_vm1, %v732_v48 }
 0x2b5 PF: > { %s13_s12 = sadd.s32 1, %s872_s12  }
 0x2b6   : > { %p10_p4 = scmp.ge.s32.totalorder %s13_s12, 4  }
 0x2b8   :  { %12 = sbr.rel (!%p10_p4) target bundleno = 1 (0x1), region = 62 }

</bundles_post_ra>
